<compile_context>
chip_gen: v5e
topology: v5e:2x2
jax: 0.10.0
libtpu: 0.0.40
codegen_flags: <defaults>
</compile_context>

<pallas_src>
import functools

import jax
import jax.numpy as jnp
from jax.experimental import pallas as pl
from jax.experimental.pallas import tpu as pltpu

_BN_EPS = 1e-5
_KNN_MAX_TILE_Q = 256                 # query-tile cap for kernel 1
_KNN_TEMP_BUDGET = 4 * 1024 * 1024    # target bytes for one (TQ, N) f32 temporary
_LAP_MAX_TILE_N = 512                 # point-tile cap for kernel 2


def _vmem_limit_bytes():
    """Generation-aware scoped-VMEM limit: ~half of physical VMEM, >= 32 MiB."""
    try:
        cap = int(pltpu.get_tpu_info().vmem_capacity_bytes)
    except Exception:                  # conservative fallback if the query fails
        cap = 64 * 1024 * 1024
    return max(32 * 1024 * 1024, min(cap // 2, 96 * 1024 * 1024))


def _knn_tile_q(n):
    """Largest query tile (multiple of 128 dividing n, or n itself) such that one
    (tile_q, n) f32 temporary stays under _KNN_TEMP_BUDGET."""
    if n % 128 != 0:
        return n
    budget_elems = _KNN_TEMP_BUDGET // 4
    t = _KNN_MAX_TILE_Q
    while t > 128 and (n % t != 0 or t * n > budget_elems):
        t //= 2
    return t


def _lap_tile_n(n):
    """Point tile for kernel 2: multiple of 128 dividing n, capped so the parallel
    grid has >= 2 steps when possible (v7x has 2 TensorCores)."""
    if n % 128 != 0:
        return n
    cap = min(_LAP_MAX_TILE_N, max(128, n // 2))
    t = 128
    while t * 2 <= cap and n % (t * 2) == 0:
        t *= 2
    return t


# --------------------------------------------------------------------------- #
# Kernel 1: fused bknn — VPU pairwise distance + in-kernel top-k               #
# --------------------------------------------------------------------------- #
def _knn_kernel(xyq_ref, xyk_ref, idx_ref, *, k):
    # xyq_ref: (1, TQ, 2) query tile (point-major, tiny: pads to TQ x 128)
    # xyk_ref: (1, 2, N)  all keys, channel-major lane-dense (resident per batch)
    # idx_ref: (1, TQ, k) int32 neighbor indices
    qx = xyq_ref[0, :, 0:1]                 # (TQ, 1)
    qy = xyq_ref[0, :, 1:2]                 # (TQ, 1)
    kx = xyk_ref[0, 0:1, :]                 # (1, N) lane-dense key rows
    ky = xyk_ref[0, 1:2, :]                 # (1, N)

    # Squared distance minus the per-query constant ||q||^2 (ordering-equivalent):
    # VPU only — at a contraction dim of 2 the MXU would be pure overhead.
    knorm = kx * kx + ky * ky               # (1, N)
    t = qx * kx + qy * ky                   # (TQ, N)
    d = knorm - (t + t)                     # ||q - k||^2 - ||q||^2

    n_keys = d.shape[1]
    ids = jax.lax.broadcasted_iota(jnp.int32, d.shape, 1).astype(jnp.float32)
    sentinel = jnp.float32(n_keys)
    inf = jnp.float32(jnp.inf)

    # Unrolled min+mask top-k (k small & static). Ties resolve to the lowest key
    # index (matches lax.top_k / torch.topk); self (distance 0) is kept on purpose.
    cols = []
    for _ in range(k):
        m = jnp.min(d, axis=1, keepdims=True)          # (TQ, 1)
        sel = jnp.where(d == m, ids, sentinel)         # (TQ, N)
        j = jnp.min(sel, axis=1, keepdims=True)        # (TQ, 1) lowest tied index
        cols.append(j)
        # `sel == j` is true at exactly the selected element — reuse it as the mask.
        d = jnp.where(sel == j, inf, d)

    idx_ref[0] = jnp.concatenate(cols, axis=1).astype(jnp.int32)   # (TQ, k)


def knn_indices(xy, k, *, tile_q=None):
    """xy: (B, 2, N) channel-major coords -> (B, N, k) int32 neighbor indices."""
    B, C, N = xy.shape
    if tile_q is None:
        tile_q = _knn_tile_q(N)
    # Point-major view is only used for the small tiled query input; the resident
    # key set stays channel-major (no (N, 128) lane padding in VMEM).
    xy_t = jnp.transpose(xy, (0, 2, 1))                 # (B, N, 2), tiny
    kernel = functools.partial(_knn_kernel, k=k)
    return pl.pallas_call(
        kernel,
        out_shape=jax.ShapeDtypeStruct((B, N, k), jnp.int32),
        grid_spec=pltpu.PrefetchScalarGridSpec(
            num_scalar_prefetch=0,
            grid=(B, N // tile_q),
            in_specs=[
                pl.BlockSpec((1, tile_q, C), lambda b, q: (b, q, 0)),  # query tile
                pl.BlockSpec((1, C, N), lambda b, q: (b, 0, 0)),       # keys (resident)
            ],
            out_specs=pl.BlockSpec((1, tile_q, k), lambda b, q: (b, q, 0)),
        ),
        compiler_params=pltpu.CompilerParams(
            dimension_semantics=("parallel", "parallel"),
            vmem_limit_bytes=_vmem_limit_bytes(),
        ),
    )(xy_t, xy)


# --------------------------------------------------------------------------- #
# Kernel 2: channel-major Laplacian -> Linear -> BatchNorm1d(train) -> ReLU    #
#           -> residual, tiled over N                                          #
# --------------------------------------------------------------------------- #
def _feature_laplacian_kernel(feat_ref, nm_ref, w_ref, bias_ref, gamma_ref,
                              beta_ref, o_ref, *, eps):
    # feat_ref/nm_ref/o_ref: (B, F, TN) channel-major; w_ref: (F, F); bias_ref: (F, 1)
    # gamma_ref/beta_ref: (1, TN) per-point BatchNorm affine params, lane-dense on N.
    n_batch, n_feat, _ = feat_ref.shape
    w = w_ref[...]
    bias = bias_ref[...]

    # Linear on the Laplacian feature; BN statistics accumulated in the same pass
    # (sum and sum-of-squares) — no second sweep over the transformed features.
    trans = []
    s = None
    sq = None
    for bi in range(n_batch):                       # B is small & static
        lap = feat_ref[bi] - nm_ref[bi]             # (F, TN) Laplacian feature
        t = jnp.dot(w, lap, preferred_element_type=jnp.float32) + bias   # (F, TN)
        trans.append(t)
        ts = t.sum(axis=0, keepdims=True)           # (1, TN)
        tq = (t * t).sum(axis=0, keepdims=True)     # (1, TN)
        s = ts if s is None else s + ts
        sq = tq if sq is None else sq + tq

    # BatchNorm1d(n_points), training mode: per-point stats over (batch, feature).
    inv_cnt = 1.0 / float(n_batch * n_feat)
    mu = s * inv_cnt                                            # (1, TN)
    var = jnp.maximum(sq * inv_cnt - mu * mu, 0.0)              # clamp E[x^2]-mu^2
    scale = jax.lax.rsqrt(var + eps) * gamma_ref[...]           # fold rsqrt into gamma
    shift = beta_ref[...] - mu * scale                          # fold mu into beta

    for bi in range(n_batch):
        bn = trans[bi] * scale + shift                          # one mul + add
        o_ref[bi] = feat_ref[bi] + jnp.maximum(bn, 0.0)         # ReLU + residual


def _laplacian_transform(feat, neigh_mean, w, b, gamma, beta, *, eps=_BN_EPS,
                         tile_n=None):
    B, F_, N = feat.shape
    if tile_n is None:
        tile_n = _lap_tile_n(N)
    kernel = functools.partial(_feature_laplacian_kernel, eps=eps)
    return pl.pallas_call(
        kernel,
        out_shape=jax.ShapeDtypeStruct((B, F_, N), jnp.float32),
        grid_spec=pltpu.PrefetchScalarGridSpec(
            num_scalar_prefetch=0,
            grid=(N // tile_n,),
            in_specs=[
                pl.BlockSpec((B, F_, tile_n), lambda n: (0, 0, n)),  # feat tile
                pl.BlockSpec((B, F_, tile_n), lambda n: (0, 0, n)),  # neighbor mean tile
                pl.BlockSpec((F_, F_), lambda n: (0, 0)),            # W, resident
                pl.BlockSpec((F_, 1), lambda n: (0, 0)),             # Linear bias
                pl.BlockSpec((1, tile_n), lambda n: (0, n)),         # gamma, lane-dense
                pl.BlockSpec((1, tile_n), lambda n: (0, n)),         # beta, lane-dense
            ],
            out_specs=pl.BlockSpec((B, F_, tile_n), lambda n: (0, 0, n)),
        ),
        compiler_params=pltpu.CompilerParams(
            dimension_semantics=("parallel",),
            vmem_limit_bytes=_vmem_limit_bytes(),
        ),
    )(feat, neigh_mean, w, b.reshape(F_, 1), gamma.reshape(1, N), beta.reshape(1, N))


# --------------------------------------------------------------------------- #
# Forward: Pallas kNN -> XLA gather/mean glue -> Pallas fused transform        #
# --------------------------------------------------------------------------- #
def feature_laplacian_forward(params, xyz, feat, *, k):
    B, F_, N = feat.shape

    # 1) Fused kNN kernel emits only (B, N, k) indices (no (B, N, N) HBM round-trip).
    idx = knn_indices(xyz[:, 0:2, :], k)                 # (B, N, k)

    # 2) Neighbor gather + mean reduction (glue). Only a (B, F, N) neighbor mean
    #    ever reaches the Pallas kernel (k-fold less HBM traffic into Kernel 2).
    # TODO(synk): the torch `.view(N, -1, F)` memory reinterpretation scrambles the
    # gathered (F, N*k) panel across (point, neighbor, feature); this data-dependent
    # gather has no clean Pallas TPU equivalent (and no one-hot matmul form), so the
    # gather+mean stays in XLA.
    def gather_mean_cm(feat_b, idx_b):
        g = feat_b[:, idx_b.reshape(-1)]                 # (F, N*k)
        return g.reshape(N, k, F_).mean(axis=1).T        # (F, N) channel-major mean
    neigh_mean = jax.vmap(gather_mean_cm)(feat, idx)     # (B, F, N)

    # 3) Fused Laplacian -> Linear -> BN(train) -> ReLU -> residual (channel-major).
    return _laplacian_transform(feat, neigh_mean, params["w"], params["b"],
                                params["gamma"], params["beta"])


# --------------------------------------------------------------------------- #
# Pure-JAX references (correctness checks)                                     #
# --------------------------------------------------------------------------- #
def _reference_knn_idx(xyz, k):
    xy = xyz[:, 0:2, :]
    inner = 2.0 * jnp.einsum("bcn,bcm->bnm", xy, xy, precision="highest")
    xx = jnp.sum(xy * xy, axis=1, keepdims=True)
    neg_dist = -(xx - inner + jnp.transpose(xx, (0, 2, 1)))   # PyTorch bknn formula
    return jax.lax.top_k(neg_dist, k)[1]                      # (B, N, k)


def _reference_from_idx(params, feat, idx, *, eps=_BN_EPS):
    B, F_, N = feat.shape
    k = idx.shape[-1]

    def gather_mean(feat_b, idx_b):
        g = feat_b[:, idx_b.reshape(-1)]                 # (F, N*k)
        return g.reshape(N, k, F_).mean(axis=1)          # torch .view reinterpretation

    nm = jax.vmap(gather_mean)(feat, idx)                # (B, N, F)
    lap = jnp.transpose(feat, (0, 2, 1)) - nm
    trans = jnp.einsum("bnf,of->bno", lap, params["w"],
                       precision="highest") + params["b"]
    mu = trans.mean(axis=(0, 2), keepdims=True)
    var = ((trans - mu) ** 2).mean(axis=(0, 2), keepdims=True)
    bn = (trans - mu) * jax.lax.rsqrt(var + eps) * params["gamma"].reshape(1, N, 1) \
         + params["beta"].reshape(1, N, 1)
    return feat + jnp.transpose(jnp.maximum(bn, 0.0), (0, 2, 1))


# --------------------------------------------------------------------------- #
if __name__ == "__main__":
    def make_inputs(key, B, N, F_):
        kx, kf, kw, kb, kg, kbe = jax.random.split(key, 6)
        xyz = jax.random.normal(kx, (B, 3, N), dtype=jnp.float32)
        feat = jax.random.normal(kf, (B, F_, N), dtype=jnp.float32)
        params = dict(
            w=0.1 * jax.random.normal(kw, (F_, F_), dtype=jnp.float32),
            b=0.1 * jax.random.normal(kb, (F_,), dtype=jnp.float32),
            gamma=1.0 + 0.1 * jax.random.normal(kg, (N,), dtype=jnp.float32),
            beta=0.1 * jax.random.normal(kbe, (N,), dtype=jnp.float32),
        )
        return params, xyz, feat

    key = jax.random.PRNGKey(0)
    k1, k2 = jax.random.split(key)

    # --- Test 1: module-sized shapes (n_points=16, k_value=4, n_feat=32). ---
    B, N, F_, K = 2, 16, 32, 4
    params, xyz, feat = make_inputs(k1, B, N, F_)
    fwd = jax.jit(functools.partial(feature_laplacian_forward, k=K))
    out = fwd(params, xyz, feat)
    jax.block_until_ready(out)
    assert out.shape == (B, F_, N) and out.dtype == jnp.float32

    idx_pallas = knn_indices(xyz[:, 0:2, :], K)
    idx_ref = _reference_knn_idx(xyz, K)
    assert jnp.array_equal(idx_pallas, idx_ref), "kNN indices mismatch"
    ref_out = _reference_from_idx(params, feat, idx_ref)
    assert jnp.allclose(out, ref_out, rtol=1e-3, atol=1e-3), "forward mismatch"

    # --- Test 2: larger N to exercise the multi-step tiled grids of both kernels. ---
    B2, N2, F2, K2 = 2, 1024, 32, 4
    params2, xyz2, feat2 = make_inputs(k2, B2, N2, F2)
    fwd2 = jax.jit(functools.partial(feature_laplacian_forward, k=K2))
    out2 = fwd2(params2, xyz2, feat2)
    jax.block_until_ready(out2)
    assert out2.shape == (B2, F2, N2) and out2.dtype == jnp.float32

    idx2 = knn_indices(xyz2[:, 0:2, :], K2)
    # Reference re-derives everything downstream from the kernel's own indices, so the
    # tiled-path check is insensitive to float-rounding ties in the kNN ordering.
    ref_out2 = _reference_from_idx(params2, feat2, idx2)
    assert jnp.allclose(out2, ref_out2, rtol=1e-3, atol=1e-3), "tiled forward mismatch"

    print("KERNEL_OK")
</pallas_src>

<mosaic_0001>
module attributes {stable_mosaic.version = 11 : i64} {
  func.func @_knn_kernel(%arg0: i32, %arg1: i32, %arg2: memref<1x16x2xf32, #tpu.memory_space<vmem>>, %arg3: memref<1x2x16xf32, #tpu.memory_space<vmem>>, %arg4: memref<1x16x4xi32, #tpu.memory_space<vmem>>) attributes {dimension_semantics = [#tpu.dimension_semantics<parallel>, #tpu.dimension_semantics<parallel>], iteration_bounds = array<i64: 2, 1>, scalar_prefetch = 0 : i64, scratch_operands = 0 : i64, tpu.core_type = #tpu.core_type<tc>, window_params = [{transform_indices = @transform_0, window_bounds = array<i64: 1, 16, 2>}, {transform_indices = @transform_1, window_bounds = array<i64: 1, 2, 16>}, {transform_indices = @transform_2, window_bounds = array<i64: 1, 16, 4>}]} {
    %c0 = arith.constant 0 : index
    %c0_0 = arith.constant 0 : index
    %c0_1 = arith.constant 0 : index
    %0 = vector.load %arg2[%c0, %c0_0, %c0_1] : memref<1x16x2xf32, #tpu.memory_space<vmem>>, vector<1x16x1xf32>
    %1 = vector.shape_cast %0 : vector<1x16x1xf32> to vector<16x1xf32>
    %c0_2 = arith.constant 0 : index
    %c0_3 = arith.constant 0 : index
    %c1 = arith.constant 1 : index
    %2 = vector.load %arg2[%c0_2, %c0_3, %c1] : memref<1x16x2xf32, #tpu.memory_space<vmem>>, vector<1x16x1xf32>
    %3 = vector.shape_cast %2 : vector<1x16x1xf32> to vector<16x1xf32>
    %c0_4 = arith.constant 0 : index
    %c0_5 = arith.constant 0 : index
    %c0_6 = arith.constant 0 : index
    %4 = vector.load %arg3[%c0_4, %c0_5, %c0_6] : memref<1x2x16xf32, #tpu.memory_space<vmem>>, vector<1x1x16xf32>
    %5 = vector.shape_cast %4 : vector<1x1x16xf32> to vector<1x16xf32>
    %c0_7 = arith.constant 0 : index
    %c1_8 = arith.constant 1 : index
    %c0_9 = arith.constant 0 : index
    %6 = vector.load %arg3[%c0_7, %c1_8, %c0_9] : memref<1x2x16xf32, #tpu.memory_space<vmem>>, vector<1x1x16xf32>
    %7 = vector.shape_cast %6 : vector<1x1x16xf32> to vector<1x16xf32>
    %8 = arith.mulf %5, %5 : vector<1x16xf32>
    %9 = arith.mulf %7, %7 : vector<1x16xf32>
    %10 = arith.addf %8, %9 : vector<1x16xf32>
    %11 = vector.broadcast %1 : vector<16x1xf32> to vector<16x16xf32>
    %12 = vector.broadcast %5 : vector<1x16xf32> to vector<16x16xf32>
    %13 = arith.mulf %11, %12 : vector<16x16xf32>
    %14 = vector.broadcast %3 : vector<16x1xf32> to vector<16x16xf32>
    %15 = vector.broadcast %7 : vector<1x16xf32> to vector<16x16xf32>
    %16 = arith.mulf %14, %15 : vector<16x16xf32>
    %17 = arith.addf %13, %16 : vector<16x16xf32>
    %18 = arith.addf %17, %17 : vector<16x16xf32>
    %19 = vector.broadcast %10 : vector<1x16xf32> to vector<16x16xf32>
    %20 = arith.subf %19, %18 : vector<16x16xf32>
    %21 = tpu.iota {dimensions = array<i32: 1>} : vector<16x16xi32>
    %22 = arith.sitofp %21 : vector<16x16xi32> to vector<16x16xf32>
    %cst = arith.constant dense<0x7F800000> : vector<16xf32>
    %23 = vector.multi_reduction <minimumf>, %20, %cst [1] : vector<16x16xf32> to vector<16xf32>
    %24 = vector.shape_cast %23 : vector<16xf32> to vector<16x1xf32>
    %25 = vector.broadcast %24 : vector<16x1xf32> to vector<16x16xf32>
    %26 = arith.cmpf oeq, %20, %25 : vector<16x16xf32>
    %cst_10 = arith.constant 1.600000e+01 : f32
    %27 = vector.broadcast %cst_10 : f32 to vector<16x16xf32>
    %28 = arith.select %26, %22, %27 : vector<16x16xi1>, vector<16x16xf32>
    %cst_11 = arith.constant dense<0x7F800000> : vector<16xf32>
    %29 = vector.multi_reduction <minimumf>, %28, %cst_11 [1] : vector<16x16xf32> to vector<16xf32>
    %30 = vector.shape_cast %29 : vector<16xf32> to vector<16x1xf32>
    %31 = vector.broadcast %30 : vector<16x1xf32> to vector<16x16xf32>
    %32 = arith.cmpf oeq, %28, %31 : vector<16x16xf32>
    %cst_12 = arith.constant 0x7F800000 : f32
    %33 = vector.broadcast %cst_12 : f32 to vector<16x16xf32>
    %34 = arith.select %32, %33, %20 : vector<16x16xi1>, vector<16x16xf32>
    %cst_13 = arith.constant dense<0x7F800000> : vector<16xf32>
    %35 = vector.multi_reduction <minimumf>, %34, %cst_13 [1] : vector<16x16xf32> to vector<16xf32>
    %36 = vector.shape_cast %35 : vector<16xf32> to vector<16x1xf32>
    %37 = vector.broadcast %36 : vector<16x1xf32> to vector<16x16xf32>
    %38 = arith.cmpf oeq, %34, %37 : vector<16x16xf32>
    %cst_14 = arith.constant 1.600000e+01 : f32
    %39 = vector.broadcast %cst_14 : f32 to vector<16x16xf32>
    %40 = arith.select %38, %22, %39 : vector<16x16xi1>, vector<16x16xf32>
    %cst_15 = arith.constant dense<0x7F800000> : vector<16xf32>
    %41 = vector.multi_reduction <minimumf>, %40, %cst_15 [1] : vector<16x16xf32> to vector<16xf32>
    %42 = vector.shape_cast %41 : vector<16xf32> to vector<16x1xf32>
    %43 = vector.broadcast %42 : vector<16x1xf32> to vector<16x16xf32>
    %44 = arith.cmpf oeq, %40, %43 : vector<16x16xf32>
    %cst_16 = arith.constant 0x7F800000 : f32
    %45 = vector.broadcast %cst_16 : f32 to vector<16x16xf32>
    %46 = arith.select %44, %45, %34 : vector<16x16xi1>, vector<16x16xf32>
    %cst_17 = arith.constant dense<0x7F800000> : vector<16xf32>
    %47 = vector.multi_reduction <minimumf>, %46, %cst_17 [1] : vector<16x16xf32> to vector<16xf32>
    %48 = vector.shape_cast %47 : vector<16xf32> to vector<16x1xf32>
    %49 = vector.broadcast %48 : vector<16x1xf32> to vector<16x16xf32>
    %50 = arith.cmpf oeq, %46, %49 : vector<16x16xf32>
    %cst_18 = arith.constant 1.600000e+01 : f32
    %51 = vector.broadcast %cst_18 : f32 to vector<16x16xf32>
    %52 = arith.select %50, %22, %51 : vector<16x16xi1>, vector<16x16xf32>
    %cst_19 = arith.constant dense<0x7F800000> : vector<16xf32>
    %53 = vector.multi_reduction <minimumf>, %52, %cst_19 [1] : vector<16x16xf32> to vector<16xf32>
    %54 = vector.shape_cast %53 : vector<16xf32> to vector<16x1xf32>
    %55 = vector.broadcast %54 : vector<16x1xf32> to vector<16x16xf32>
    %56 = arith.cmpf oeq, %52, %55 : vector<16x16xf32>
    %cst_20 = arith.constant 0x7F800000 : f32
    %57 = vector.broadcast %cst_20 : f32 to vector<16x16xf32>
    %58 = arith.select %56, %57, %46 : vector<16x16xi1>, vector<16x16xf32>
    %cst_21 = arith.constant dense<0x7F800000> : vector<16xf32>
    %59 = vector.multi_reduction <minimumf>, %58, %cst_21 [1] : vector<16x16xf32> to vector<16xf32>
    %60 = vector.shape_cast %59 : vector<16xf32> to vector<16x1xf32>
    %61 = vector.broadcast %60 : vector<16x1xf32> to vector<16x16xf32>
    %62 = arith.cmpf oeq, %58, %61 : vector<16x16xf32>
    %cst_22 = arith.constant 1.600000e+01 : f32
    %63 = vector.broadcast %cst_22 : f32 to vector<16x16xf32>
    %64 = arith.select %62, %22, %63 : vector<16x16xi1>, vector<16x16xf32>
    %cst_23 = arith.constant dense<0x7F800000> : vector<16xf32>
    %65 = vector.multi_reduction <minimumf>, %64, %cst_23 [1] : vector<16x16xf32> to vector<16xf32>
    %66 = vector.shape_cast %65 : vector<16xf32> to vector<16x1xf32>
    %67 = tpu.concatenate %30, %42, %54, %66 in 1 : vector<16x1xf32>, vector<16x1xf32>, vector<16x1xf32>, vector<16x1xf32> -> vector<16x4xf32>
    %68 = arith.fptosi %67 : vector<16x4xf32> to vector<16x4xi32>
    %c0_24 = arith.constant 0 : index
    %c0_25 = arith.constant 0 : index
    %c0_26 = arith.constant 0 : index
    %69 = vector.load %arg4[%c0_24, %c0_25, %c0_26] : memref<1x16x4xi32, #tpu.memory_space<vmem>>, vector<1x16x4xi32>
    %70 = vector.shape_cast %69 : vector<1x16x4xi32> to vector<16x4xi32>
    %71 = vector.shape_cast %68 : vector<16x4xi32> to vector<1x16x4xi32>
    tpu.vector_store %arg4[%c0_24, %c0_25, %c0_26], %71 {strides = array<i32>} : memref<1x16x4xi32, #tpu.memory_space<vmem>>, vector<1x16x4xi32>,
    return
  }
  func.func @transform_0(%arg0: i32, %arg1: i32) -> (i32, i32, i32) {
    %c0_i32 = arith.constant 0 : i32
    %c0_i32_0 = arith.constant 0 : i32
    return %arg0, %arg1, %c0_i32 : i32, i32, i32
  }
  func.func @transform_1(%arg0: i32, %arg1: i32) -> (i32, i32, i32) {
    %c0_i32 = arith.constant 0 : i32
    %c0_i32_0 = arith.constant 0 : i32
    %c0_i32_1 = arith.constant 0 : i32
    return %arg0, %c0_i32, %c0_i32_0 : i32, i32, i32
  }
  func.func @transform_2(%arg0: i32, %arg1: i32) -> (i32, i32, i32) {
    %c0_i32 = arith.constant 0 : i32
    %c0_i32_0 = arith.constant 0 : i32
    return %arg0, %arg1, %c0_i32 : i32, i32, i32
  }
}

module attributes {stable_mosaic.version = 11 : i64} {
  func.func @_feature_laplacian_kernel(%arg0: i32, %arg1: memref<2x32x16xf32, #tpu.memory_space<vmem>>, %arg2: memref<2x32x16xf32, #tpu.memory_space<vmem>>, %arg3: memref<32x32xf32, #tpu.memory_space<vmem>>, %arg4: memref<32x1xf32, #tpu.memory_space<vmem>>, %arg5: memref<1x16xf32, #tpu.memory_space<vmem>>, %arg6: memref<1x16xf32, #tpu.memory_space<vmem>>, %arg7: memref<2x32x16xf32, #tpu.memory_space<vmem>>) attributes {dimension_semantics = [#tpu.dimension_semantics<parallel>], iteration_bounds = array<i64: 1>, scalar_prefetch = 0 : i64, scratch_operands = 0 : i64, tpu.core_type = #tpu.core_type<tc>, window_params = [{transform_indices = @transform_0, window_bounds = array<i64: 2, 32, 16>}, {transform_indices = @transform_1, window_bounds = array<i64: 2, 32, 16>}, {pipeline_mode = #tpu.pipeline_mode<synchronous>, transform_indices = @transform_2, window_bounds = array<i64: 32, 32>}, {pipeline_mode = #tpu.pipeline_mode<synchronous>, transform_indices = @transform_3, window_bounds = array<i64: 32, 1>}, {transform_indices = @transform_4, window_bounds = array<i64: 1, 16>}, {transform_indices = @transform_5, window_bounds = array<i64: 1, 16>}, {transform_indices = @transform_6, window_bounds = array<i64: 2, 32, 16>}]} {
    %c0 = arith.constant 0 : index
    %c0_0 = arith.constant 0 : index
    %0 = vector.load %arg3[%c0, %c0_0] : memref<32x32xf32, #tpu.memory_space<vmem>>, vector<32x32xf32>
    %c0_1 = arith.constant 0 : index
    %c0_2 = arith.constant 0 : index
    %1 = vector.load %arg4[%c0_1, %c0_2] : memref<32x1xf32, #tpu.memory_space<vmem>>, vector<32x1xf32>
    %c0_3 = arith.constant 0 : index
    %c0_4 = arith.constant 0 : index
    %c0_5 = arith.constant 0 : index
    %2 = vector.load %arg1[%c0_3, %c0_4, %c0_5] : memref<2x32x16xf32, #tpu.memory_space<vmem>>, vector<1x32x16xf32>
    %3 = vector.shape_cast %2 : vector<1x32x16xf32> to vector<32x16xf32>
    %c0_6 = arith.constant 0 : index
    %c0_7 = arith.constant 0 : index
    %c0_8 = arith.constant 0 : index
    %4 = vector.load %arg2[%c0_6, %c0_7, %c0_8] : memref<2x32x16xf32, #tpu.memory_space<vmem>>, vector<1x32x16xf32>
    %5 = vector.shape_cast %4 : vector<1x32x16xf32> to vector<32x16xf32>
    %6 = arith.subf %3, %5 : vector<32x16xf32>
    %cst = arith.constant dense<0.000000e+00> : vector<32x16xf32>
    %7 = tpu.matmul %0, %6, %cst {dimension_numbers = #tpu.dot_dimension_numbers<[1], [0], [0], [1], [0, 0, 1, 1], [], []>} : vector<32x32xf32>, vector<32x16xf32>, vector<32x16xf32> -> vector<32x16xf32>
    %8 = vector.broadcast %1 : vector<32x1xf32> to vector<32x16xf32>
    %9 = arith.addf %7, %8 : vector<32x16xf32>
    %cst_9 = arith.constant dense<0.000000e+00> : vector<16xf32>
    %10 = vector.multi_reduction <add>, %9, %cst_9 [0] : vector<32x16xf32> to vector<16xf32>
    %11 = vector.shape_cast %10 : vector<16xf32> to vector<1x16xf32>
    %12 = arith.mulf %9, %9 : vector<32x16xf32>
    %cst_10 = arith.constant dense<0.000000e+00> : vector<16xf32>
    %13 = vector.multi_reduction <add>, %12, %cst_10 [0] : vector<32x16xf32> to vector<16xf32>
    %14 = vector.shape_cast %13 : vector<16xf32> to vector<1x16xf32>
    %c1 = arith.constant 1 : index
    %c0_11 = arith.constant 0 : index
    %c0_12 = arith.constant 0 : index
    %15 = vector.load %arg1[%c1, %c0_11, %c0_12] : memref<2x32x16xf32, #tpu.memory_space<vmem>>, vector<1x32x16xf32>
    %16 = vector.shape_cast %15 : vector<1x32x16xf32> to vector<32x16xf32>
    %c1_13 = arith.constant 1 : index
    %c0_14 = arith.constant 0 : index
    %c0_15 = arith.constant 0 : index
    %17 = vector.load %arg2[%c1_13, %c0_14, %c0_15] : memref<2x32x16xf32, #tpu.memory_space<vmem>>, vector<1x32x16xf32>
    %18 = vector.shape_cast %17 : vector<1x32x16xf32> to vector<32x16xf32>
    %19 = arith.subf %16, %18 : vector<32x16xf32>
    %cst_16 = arith.constant dense<0.000000e+00> : vector<32x16xf32>
    %20 = tpu.matmul %0, %19, %cst_16 {dimension_numbers = #tpu.dot_dimension_numbers<[1], [0], [0], [1], [0, 0, 1, 1], [], []>} : vector<32x32xf32>, vector<32x16xf32>, vector<32x16xf32> -> vector<32x16xf32>
    %21 = vector.broadcast %1 : vector<32x1xf32> to vector<32x16xf32>
    %22 = arith.addf %20, %21 : vector<32x16xf32>
    %cst_17 = arith.constant dense<0.000000e+00> : vector<16xf32>
    %23 = vector.multi_reduction <add>, %22, %cst_17 [0] : vector<32x16xf32> to vector<16xf32>
    %24 = vector.shape_cast %23 : vector<16xf32> to vector<1x16xf32>
    %25 = arith.mulf %22, %22 : vector<32x16xf32>
    %cst_18 = arith.constant dense<0.000000e+00> : vector<16xf32>
    %26 = vector.multi_reduction <add>, %25, %cst_18 [0] : vector<32x16xf32> to vector<16xf32>
    %27 = vector.shape_cast %26 : vector<16xf32> to vector<1x16xf32>
    %28 = arith.addf %11, %24 : vector<1x16xf32>
    %29 = arith.addf %14, %27 : vector<1x16xf32>
    %cst_19 = arith.constant 1.562500e-02 : f32
    %30 = vector.broadcast %cst_19 : f32 to vector<1x16xf32>
    %31 = arith.mulf %28, %30 : vector<1x16xf32>
    %cst_20 = arith.constant 1.562500e-02 : f32
    %32 = vector.broadcast %cst_20 : f32 to vector<1x16xf32>
    %33 = arith.mulf %29, %32 : vector<1x16xf32>
    %34 = arith.mulf %31, %31 : vector<1x16xf32>
    %35 = arith.subf %33, %34 : vector<1x16xf32>
    %cst_21 = arith.constant 0.000000e+00 : f32
    %36 = vector.broadcast %cst_21 : f32 to vector<1x16xf32>
    %37 = arith.maximumf %35, %36 : vector<1x16xf32>
    %cst_22 = arith.constant 9.99999974E-6 : f32
    %38 = vector.broadcast %cst_22 : f32 to vector<1x16xf32>
    %39 = arith.addf %37, %38 : vector<1x16xf32>
    %40 = math.rsqrt %39 : vector<1x16xf32>
    %c0_23 = arith.constant 0 : index
    %c0_24 = arith.constant 0 : index
    %41 = vector.load %arg5[%c0_23, %c0_24] : memref<1x16xf32, #tpu.memory_space<vmem>>, vector<1x16xf32>
    %42 = arith.mulf %40, %41 : vector<1x16xf32>
    %c0_25 = arith.constant 0 : index
    %c0_26 = arith.constant 0 : index
    %43 = vector.load %arg6[%c0_25, %c0_26] : memref<1x16xf32, #tpu.memory_space<vmem>>, vector<1x16xf32>
    %44 = arith.mulf %31, %42 : vector<1x16xf32>
    %45 = arith.subf %43, %44 : vector<1x16xf32>
    %46 = vector.broadcast %42 : vector<1x16xf32> to vector<32x16xf32>
    %47 = arith.mulf %9, %46 : vector<32x16xf32>
    %48 = vector.broadcast %45 : vector<1x16xf32> to vector<32x16xf32>
    %49 = arith.addf %47, %48 : vector<32x16xf32>
    %c0_27 = arith.constant 0 : index
    %c0_28 = arith.constant 0 : index
    %c0_29 = arith.constant 0 : index
    %50 = vector.load %arg1[%c0_27, %c0_28, %c0_29] : memref<2x32x16xf32, #tpu.memory_space<vmem>>, vector<1x32x16xf32>
    %51 = vector.shape_cast %50 : vector<1x32x16xf32> to vector<32x16xf32>
    %cst_30 = arith.constant 0.000000e+00 : f32
    %52 = vector.broadcast %cst_30 : f32 to vector<32x16xf32>
    %53 = arith.maximumf %49, %52 : vector<32x16xf32>
    %54 = arith.addf %51, %53 : vector<32x16xf32>
    %c0_31 = arith.constant 0 : index
    %c0_32 = arith.constant 0 : index
    %c0_33 = arith.constant 0 : index
    %55 = vector.load %arg7[%c0_31, %c0_32, %c0_33] : memref<2x32x16xf32, #tpu.memory_space<vmem>>, vector<1x32x16xf32>
    %56 = vector.shape_cast %55 : vector<1x32x16xf32> to vector<32x16xf32>
    %57 = vector.shape_cast %54 : vector<32x16xf32> to vector<1x32x16xf32>
    tpu.vector_store %arg7[%c0_31, %c0_32, %c0_33], %57 {strides = array<i32>} : memref<2x32x16xf32, #tpu.memory_space<vmem>>, vector<1x32x16xf32>,
    %58 = vector.broadcast %42 : vector<1x16xf32> to vector<32x16xf32>
    %59 = arith.mulf %22, %58 : vector<32x16xf32>
    %60 = vector.broadcast %45 : vector<1x16xf32> to vector<32x16xf32>
    %61 = arith.addf %59, %60 : vector<32x16xf32>
    %c1_34 = arith.constant 1 : index
    %c0_35 = arith.constant 0 : index
    %c0_36 = arith.constant 0 : index
    %62 = vector.load %arg1[%c1_34, %c0_35, %c0_36] : memref<2x32x16xf32, #tpu.memory_space<vmem>>, vector<1x32x16xf32>
    %63 = vector.shape_cast %62 : vector<1x32x16xf32> to vector<32x16xf32>
    %cst_37 = arith.constant 0.000000e+00 : f32
    %64 = vector.broadcast %cst_37 : f32 to vector<32x16xf32>
    %65 = arith.maximumf %61, %64 : vector<32x16xf32>
    %66 = arith.addf %63, %65 : vector<32x16xf32>
    %c1_38 = arith.constant 1 : index
    %c0_39 = arith.constant 0 : index
    %c0_40 = arith.constant 0 : index
    %67 = vector.load %arg7[%c1_38, %c0_39, %c0_40] : memref<2x32x16xf32, #tpu.memory_space<vmem>>, vector<1x32x16xf32>
    %68 = vector.shape_cast %67 : vector<1x32x16xf32> to vector<32x16xf32>
    %69 = vector.shape_cast %66 : vector<32x16xf32> to vector<1x32x16xf32>
    tpu.vector_store %arg7[%c1_38, %c0_39, %c0_40], %69 {strides = array<i32>} : memref<2x32x16xf32, #tpu.memory_space<vmem>>, vector<1x32x16xf32>,
    return
  }
  func.func @transform_0(%arg0: i32) -> (i32, i32, i32) {
    %c0_i32 = arith.constant 0 : i32
    %c0_i32_0 = arith.constant 0 : i32
    %c0_i32_1 = arith.constant 0 : i32
    return %c0_i32, %c0_i32_0, %arg0 : i32, i32, i32
  }
  func.func @transform_1(%arg0: i32) -> (i32, i32, i32) {
    %c0_i32 = arith.constant 0 : i32
    %c0_i32_0 = arith.constant 0 : i32
    %c0_i32_1 = arith.constant 0 : i32
    return %c0_i32, %c0_i32_0, %arg0 : i32, i32, i32
  }
  func.func @transform_2(%arg0: i32) -> (i32, i32) {
    %c0_i32 = arith.constant 0 : i32
    %c0_i32_0 = arith.constant 0 : i32
    %c0_i32_1 = arith.constant 0 : i32
    return %c0_i32, %c0_i32_0 : i32, i32
  }
  func.func @transform_3(%arg0: i32) -> (i32, i32) {
    %c0_i32 = arith.constant 0 : i32
    %c0_i32_0 = arith.constant 0 : i32
    %c0_i32_1 = arith.constant 0 : i32
    return %c0_i32, %c0_i32_0 : i32, i32
  }
  func.func @transform_4(%arg0: i32) -> (i32, i32) {
    %c0_i32 = arith.constant 0 : i32
    %c0_i32_0 = arith.constant 0 : i32
    return %c0_i32, %arg0 : i32, i32
  }
  func.func @transform_5(%arg0: i32) -> (i32, i32) {
    %c0_i32 = arith.constant 0 : i32
    %c0_i32_0 = arith.constant 0 : i32
    return %c0_i32, %arg0 : i32, i32
  }
  func.func @transform_6(%arg0: i32) -> (i32, i32, i32) {
    %c0_i32 = arith.constant 0 : i32
    %c0_i32_0 = arith.constant 0 : i32
    %c0_i32_1 = arith.constant 0 : i32
    return %c0_i32, %c0_i32_0, %arg0 : i32, i32, i32
  }
}

</mosaic_0001>

<bundles_post_ra>
// kernel: feature_laplacian_forward.2
= control target key start
LH: loop header
LB: loop body
LE: loop exit
PB: predicated region body
PF: predicated region fallthrough
CT: control target
= control target key end

     0   :  { %s527_s9 = smov 0   ;;  %s529_s10 = smov 0   ;;  %s607_s0 = inlined_call_operand.vmem [shape: f32[2,16,2], index: 0, kind: input, shape index: {}]   ;;  %s608_s1 = inlined_call_operand.vmem [shape: f32[2,2,16], index: 1, kind: input, shape index: {}]   ;;  %s609_s2 = inlined_call_operand.vmem [shape: s32[2,16,4], index: 2, kind: output, shape index: {}]  }
   0x1   :  { %s531_s11 = smov 0  }
   0x2 LB: > { %s24_s12 = sadd.s32 1, %s504_s10  ;;  %p435_p0 = scmp.ge.s32.totalorder %s508_s11, 1  ;;  %s508_s11 = sphi %s531_s11, %s12_s11   ;;  %s504_s10 = sphi %s529_s10, %s611_s10   ;;  %s500_s9 = sphi %s527_s9, %s610_s9  }
   0x3   : > { %p26_p1 = scmp.ge.s32.totalorder %s24_s12, 2  ;;  %p142_p2 = scmp.lt.s32.totalorder %s508_s11, 3 }
   0x5   : > { %s613_s12 = smov (%p26_p1, %s24_s12), 0  ;;  %p143_p3 = pnand %p435_p0, %p142_p2 }
   0x6   : > { %p177_p4 = scmp.lt.s32.totalorder (!%p143_p3), %s500_s9, 1 }
   0x7   : > { %146 = sbr.rel (%p143_p3) target bundleno = 1104 (0x450), region = 28 }
   0xc   : > { %v510_v0 = vmov 1   ;;  %v511_v1 = vmov 0   ;;  %s615_s9 = smov (!%p177_p4, %s500_s9), 1  ;;  %vm241_vm0 = vcmask 130048   ;;  %v238_v28 = vlaneseq }
   0xd   : > { %482 = vset.pattern.permute.xlu1 %v510_v0  ;;  %481 = vset.pattern.permute.xlu0 %v511_v1  ;;  %s443_s13 = sshll.u32 %s615_s9, 4  ;;  %s438_s17 = sshll.u32 %s615_s9, 1  ;;  %vm318_vm15 = vcmask 7168  }
   0xe   : > { %s184_s16 = scalar_lea.vmem %s607_s0, %s443_s13  ;;  %s189_s20 = scalar_lea.vmem %s608_s1, %s438_s17  ;;  %v239_v29 = vand.u32 127, %v238_v28 }
   0xf   : > { %v200_v2 = vld [vmem:[%s184_s16] sm:$0xff]  ;;  %v201_v3 = vld [vmem:[%s184_s16 + $0x8] sm:$0xff]  ;;  %s198_s23 = scalar_lea.vmem %s609_s2, %s443_s13 }
  0x10   : > { %221 = vperm.xlu1 %482, %v200_v2   ;;  %209 = vperm.xlu0 %481, %v200_v2   ;;  %v203_v4 = vld [vmem:[%s189_s20 + $0x1] sm:$0x1]  ;;  %v202_v5 = vld [vmem:[%s189_s20] sm:$0x1]  ;;  %v559_v30 = vcvt.s32.f32 %v239_v29 }
  0x11   : > { %v205_v6 = vmul.f32 %v203_v4, %v203_v4  ;;  %v204_v7 = vmul.f32 %v202_v5, %v202_v5  ;;  %v484_v8 = vld [vmem:[%s189_s20 + $0x1] ss:$0 sm:$0xff]  ;;  %v485_v9 = vld [vmem:[%s189_s20] ss:$0 sm:$0xff] }
  0x13   : > { %v206_v10 = vadd.f32 %v205_v6, %v204_v7 }
  0x15   : > { %v235_v16 = vperm.slane %v206_v10, 0 }
  0x18   : > { %225 = vperm.xlu1 %482, %v201_v3   ;;  %214 = vperm.xlu0 %481, %v201_v3  }
  0x20   : > { %483 = vset.pattern.permute.xlu0 %v510_v0 }
  0x82   : > { %v222_v11 = vpop.permute.xlu1 %221  ;;  %v210_v12 = vpop.permute.xlu0 %209 }
  0x83   : > { %v229_v13 = vmul.f32 %v484_v8, %v222_v11  ;;  %v218_v14 = vmul.f32 %v485_v9, %v210_v12 }
  0x85   : > { %v231_v15 = vadd.f32 %v229_v13, %v218_v14 }
  0x87   : > { %v233_v17 = vadd.f32 %v231_v15, %v231_v15 }
  0x89   : > { %v236_v18 = vsub.f32 %v235_v16, %v233_v17 }
  0x8a   : > { %v226_v19 = vpop.permute.xlu1 %225  ;;  %v215_v20 = vpop.permute.xlu0 %214 }
  0x8b   : > { %v230_v21 = vmul.f32 %v484_v8, %v226_v19  ;;  %v219_v22 = vmul.f32 %v485_v9, %v215_v20  ;;  %v242_v23 = vsel %vm241_vm0, %v236_v18, inf }
  0x8c   : > { %243 = vmin.xlane.f32.xlu2 %v242_v23 }
  0x8d   : > { %v232_v24 = vadd.f32 %v230_v21, %v219_v22 }
  0x8f   : > { %v234_v25 = vadd.f32 %v232_v24, %v232_v24 }
  0x91   : > { %v237_v26 = vsub.f32 %v235_v16, %v234_v25 }
  0x93   : > { %v245_v27 = vsel %vm241_vm0, %v237_v26, inf }
  0x94   : > { %246 = vmin.xlane.f32.xlu2 %v245_v27 }
  0xff   : > { %v244_v31 = vpop.xlane.xlu2 %243 }
 0x100   : > { %vm248_vm1 = vcmp.eq.f32.partialorder %v236_v18, %v244_v31 }
 0x101   : > { %v250_v32 = vsel %vm248_vm1, %v559_v30, 16.0  ;;  %vm321_vm1 = vcmask 15360  }
 0x102   : > { %v252_v33 = vsel %vm241_vm0, %v250_v32, inf }
 0x103   : > { %253 = vmin.xlane.f32.xlu0 %v252_v33 }
 0x107   : > { %v247_v34 = vpop.xlane.xlu2 %246 }
 0x108   : > { %vm249_vm2 = vcmp.eq.f32.partialorder %v237_v26, %v247_v34 }
 0x109   : > { %v251_v35 = vsel %vm249_vm2, %v559_v30, 16.0  ;;  %vm324_vm2 = vcmask 23552  }
 0x10a   : > { %v255_v36 = vsel %vm241_vm0, %v251_v35, inf }
 0x10b   : > { %256 = vmin.xlane.f32.xlu1 %v255_v36 }
 0x176   : > { %v565_v37 = vpop.xlane.xlu0 %253 }
 0x177   : > { %vm258_vm3 = vcmp.eq.f32.partialorder %v250_v32, %v565_v37 }
 0x178   : > { %v260_v38 = vsel %vm258_vm3, inf, %v236_v18 }
 0x179   : > { %v262_v39 = vsel %vm241_vm0, %v260_v38, inf }
 0x17a   : > { %263 = vmin.xlane.f32.xlu2 %v262_v39 }
 0x17e   : > { %v569_v40 = vpop.xlane.xlu1 %256 }
 0x17f   : > { %vm259_vm4 = vcmp.eq.f32.partialorder %v251_v35, %v569_v40 }
 0x180   : > { %v261_v41 = vsel %vm259_vm4, inf, %v237_v26  ;;  %vm329_vm4 = vcmask 31744  }
 0x181   : > { %v265_v42 = vsel %vm241_vm0, %v261_v41, inf }
 0x182   : > { %266 = vmin.xlane.f32.xlu2 %v265_v42 }
 0x1ed   : > { %v264_v43 = vpop.xlane.xlu2 %263 }
 0x1ee   : > { %vm268_vm5 = vcmp.eq.f32.partialorder %v260_v38, %v264_v43 }
 0x1ef   : > { %v270_v44 = vsel %vm268_vm5, %v559_v30, 16.0 }
 0x1f0   : > { %v272_v45 = vsel %vm241_vm0, %v270_v44, inf }
 0x1f1   : > { %273 = vmin.xlane.f32.xlu2 %v272_v45 }
 0x1f5   : > { %v267_v46 = vpop.xlane.xlu2 %266 }
 0x1f6   : > { %vm269_vm6 = vcmp.eq.f32.partialorder %v261_v41, %v267_v46 }
 0x1f7   : > { %v271_v47 = vsel %vm269_vm6, %v559_v30, 16.0 }
 0x1f8   : > { %v275_v48 = vsel %vm241_vm0, %v271_v47, inf }
 0x1f9   : > { %276 = vmin.xlane.f32.xlu2 %v275_v48 }
 0x264   : > { %v274_v49 = vpop.xlane.xlu2 %273 }
 0x265   : > { %vm278_vm7 = vcmp.eq.f32.partialorder %v270_v44, %v274_v49  ;;  %v319_v9 = vsel %vm318_vm15, %v565_v37, %v274_v49 }
 0x266   : > { %v280_v50 = vsel %vm278_vm7, inf, %v260_v38 }
 0x267   : > { %v282_v51 = vsel %vm241_vm0, %v280_v50, inf }
 0x268   : > { %283 = vmin.xlane.f32.xlu2 %v282_v51 }
 0x26c   : > { %v277_v52 = vpop.xlane.xlu2 %276 }
 0x26d   : > { %vm279_vm8 = vcmp.eq.f32.partialorder %v271_v47, %v277_v52  ;;  %v320_v17 = vsel %vm318_vm15, %v569_v40, %v277_v52 }
 0x26e   : > { %v281_v53 = vsel %vm279_vm8, inf, %v261_v41 }
 0x26f   : > { %v285_v54 = vsel %vm241_vm0, %v281_v53, inf }
 0x270   : > { %286 = vmin.xlane.f32.xlu2 %v285_v54 }
 0x2db   : > { %v284_v55 = vpop.xlane.xlu2 %283 }
 0x2dc   : > { %vm288_vm9 = vcmp.eq.f32.partialorder %v280_v50, %v284_v55 }
 0x2dd   : > { %v290_v56 = vsel %vm288_vm9, %v559_v30, 16.0 }
 0x2de   : > { %v292_v57 = vsel %vm241_vm0, %v290_v56, inf }
 0x2df   : > { %293 = vmin.xlane.f32.xlu0 %v292_v57 }
 0x2e3   : > { %v287_v58 = vpop.xlane.xlu2 %286 }
 0x2e4   : > { %vm289_vm10 = vcmp.eq.f32.partialorder %v281_v53, %v287_v58 }
 0x2e5   : > { %v291_v59 = vsel %vm289_vm10, %v559_v30, 16.0 }
 0x2e6   : > { %v295_v60 = vsel %vm241_vm0, %v291_v59, inf }
 0x2e7   : > { %296 = vmin.xlane.f32.xlu1 %v295_v60 }
 0x352   : > { %v294_v61 = vpop.xlane.xlu0 %293 }
 0x353   : > { %vm298_vm11 = vcmp.eq.f32.partialorder %v290_v56, %v294_v61  ;;  %v322_v10 = vsel %vm321_vm1, %v319_v9, %v294_v61 }
 0x354   : > { %v300_v62 = vsel %vm298_vm11, inf, %v280_v50 }
 0x355   : > { %v302_v63 = vsel %vm241_vm0, %v300_v62, inf }
 0x356   : > { %303 = vmin.xlane.f32.xlu2 %v302_v63 }
 0x35a   : > { %v297_v0 = vpop.xlane.xlu1 %296 }
 0x35b   : > { %vm299_vm12 = vcmp.eq.f32.partialorder %v291_v59, %v297_v0  ;;  %v323_v18 = vsel %vm321_vm1, %v320_v17, %v297_v0 }
 0x35c   : > { %v301_v1 = vsel %vm299_vm12, inf, %v281_v53 }
 0x35d   : > { %v305_v2 = vsel %vm241_vm0, %v301_v1, inf }
 0x35e   : > { %306 = vmin.xlane.f32.xlu0 %v305_v2 }
 0x3c9   : > { %v304_v3 = vpop.xlane.xlu2 %303 }
 0x3ca   : > { %vm308_vm13 = vcmp.eq.f32.partialorder %v300_v62, %v304_v3 }
 0x3cb   : > { %v310_v4 = vsel %vm308_vm13, %v559_v30, 16.0 }
 0x3cc   : > { %v312_v5 = vsel %vm241_vm0, %v310_v4, inf }
 0x3cd   : > { %313 = vmin.xlane.f32.xlu1 %v312_v5 }
 0x3d1   : > { %v307_v6 = vpop.xlane.xlu0 %306 }
 0x3d2   : > { %vm309_vm14 = vcmp.eq.f32.partialorder %v301_v1, %v307_v6 }
 0x3d3   : > { %v311_v7 = vsel %vm309_vm14, %v559_v30, 16.0 }
 0x3d4   : > { %v315_v8 = vsel %vm241_vm0, %v311_v7, inf }
 0x3d5   : > { %316 = vmin.xlane.f32.xlu2 %v315_v8 }
 0x440   : > { %v314_v11 = vpop.xlane.xlu1 %313 }
 0x441   : > { %v325_v12 = vsel %vm324_vm2, %v322_v10, %v314_v11 }
 0x442   : > { %vm445_vm3 = vcmp.lt.s32.totalorder %v325_v12, 0  ;;  %v446_v13 = vceil.f32 %v325_v12  ;;  %v447_v14 = vfloor.f32 %v325_v12 }
 0x444   : > { %v448_v15 = vsel %vm445_vm3, %v446_v13, %v447_v14 }
 0x445   : > { %v449_v16 = vcvt.f32.s32 %v448_v15 }
 0x447   : > { %330 = vst.msk [vmem:[%s198_s23] sm:$0xff] %vm329_vm4, %v449_v16 }
 0x448   : > { %v317_v19 = vpop.xlane.xlu2 %316 }
 0x449   : > { %v326_v20 = vsel %vm324_vm2, %v323_v18, %v317_v19 }
 0x44a   : > { %vm450_vm0 = vcmp.lt.s32.totalorder %v326_v20, 0  ;;  %v451_v21 = vceil.f32 %v326_v20  ;;  %v452_v22 = vfloor.f32 %v326_v20 }
 0x44c   : > { %v453_v23 = vsel %vm450_vm0, %v451_v21, %v452_v22 }
 0x44d   : > { %v454_v24 = vcvt.f32.s32 %v453_v23 }
 0x44f   : > { %331 = vst.msk [vmem:[%s198_s23 + $0x8] sm:$0xff] %vm329_vm4, %v454_v24 }
 0x450 PF: > { %s12_s11 = sadd.s32 1, %s508_s11   ;;  %s610_s9 = smov %s504_s10 }
 0x451   : > { %p9_p5 = scmp.ge.s32.totalorder %s12_s11, 4   ;;  %s611_s10 = smov %s613_s12 }
 0x453   :  { %11 = sbr.rel (!%p9_p5) target bundleno = 2 (0x2), region = 61 }

// kernel: feature_laplacian_forward.3
= control target key start
LH: loop header
LB: loop body
LE: loop exit
PB: predicated region body
PF: predicated region fallthrough
CT: control target
= control target key end

     0   :  { %v322_v3 = vmov 0   ;;  %vm63_vm0 = vcmask 261120   ;;  %vm105_vm1 = vcmask 130048   ;;  %s572_s0 = inlined_call_operand.vmem [shape: f32[2,32,16], index: 0, kind: input, shape index: {}]   ;;  %s573_s1 = inlined_call_operand.vmem [shape: f32[2,32,16], index: 1, kind: input, shape index: {}]   ;;  %s574_s2 = inlined_call_operand.vmem [shape: f32[32,32], index: 2, kind: input, shape index: {}]   ;;  %s575_s3 = inlined_call_operand.vmem [shape: f32[32,1], index: 3, kind: input, shape index: {}]   ;;  %s576_s4 = inlined_call_operand.vmem [shape: f32[1,16], index: 4, kind: input, shape index: {}]   ;;  %s577_s5 = inlined_call_operand.vmem [shape: f32[1,16], index: 5, kind: input, shape index: {}]   ;;  %s578_s6 = inlined_call_operand.vmem [shape: f32[2,32,16], index: 6, kind: output, shape index: {}]  }
   0x1   :  { %v361_v0 = vld [vmem:[%s572_s0 + $0x18] sm:$0xff]  ;;  %318 = vset.pattern.permute.xlu0 %v322_v3  ;;  %319 = vset.pattern.permute.xlu1 %v322_v3  ;;  %v378_v6 = vld [vmem:[%s572_s0 + $0x10] sm:$0xff]  ;;  %v396_v12 = vld [vmem:[%s572_s0 + $0x8] sm:$0xff] }
   0x2   :  { %v38_v1 = vld [vmem:[%s573_s1 + $0x18] sm:$0xff]  ;;  %v37_v7 = vld [vmem:[%s573_s1 + $0x10] sm:$0xff]  ;;  %v36_v14 = vld [vmem:[%s573_s1 + $0x8] sm:$0xff] }
   0x3   :  { %v369_v2 = vld [vmem:[%s572_s0 + $0x38] sm:$0xff]  ;;  %v42_v4 = vsub.f32 %v361_v0, %v38_v1  ;;  %v41_v9 = vsub.f32 %v378_v6, %v37_v7  ;;  %v388_v10 = vld [vmem:[%s572_s0 + $0x30] sm:$0xff]  ;;  %v405_v15 = vld [vmem:[%s572_s0 + $0x28] sm:$0xff]  ;;  %v40_v17 = vsub.f32 %v396_v12, %v36_v14 }
   0x4   :  { %v296_v5 = vld [vmem:[%s573_s1 + $0x38] sm:$0xff]  ;;  %v295_v11 = vld [vmem:[%s573_s1 + $0x30] sm:$0xff]  ;;  %v294_v16 = vld [vmem:[%s573_s1 + $0x28] sm:$0xff] }
   0x5   :  { %v149_v8 = vsub.f32 %v369_v2, %v296_v5  ;;  %88 = vmatpush.msra.mxu0 %v42_v4  ;;  %309 = vmatpush.msra.mxu2 %v42_v4  ;;  %v148_v13 = vsub.f32 %v388_v10, %v295_v11  ;;  %v147_v18 = vsub.f32 %v405_v15, %v294_v16  ;;  %v415_v19 = vld [vmem:[%s572_s0] sm:$0xff]  ;;  %v25_v26 = vld [vmem:[%s574_s2 + $0x10] sm:$0xff]  ;;  %v24_v29 = vld [vmem:[%s574_s2 + $0x8] sm:$0xff] }
   0x6   :  { %v35_v20 = vld [vmem:[%s573_s1] sm:$0xff]  ;;  %v29_v28 = vld [vmem:[%s575_s3 + $0x10] sm:$0xff]  ;;  %v26_v30 = vld [vmem:[%s574_s2 + $0x18] sm:$0xff] }
   0x7   :  { %162 = vmatpush.msra.mxu1 %v149_v8  ;;  %313 = vmatpush.msra.mxu3 %v149_v8  ;;  %v423_v21 = vld [vmem:[%s572_s0 + $0x20] sm:$0xff]  ;;  %v39_v22 = vsub.f32 %v415_v19, %v35_v20  ;;  %v28_v31 = vld [vmem:[%s575_s3 + $0x8] sm:$0xff]  ;;  %v30_v32 = vld [vmem:[%s575_s3 + $0x18] sm:$0xff] }
   0x8   :  { %89 = vmatpush.msra.mxu0 %v41_v9  ;;  %310 = vmatpush.msra.mxu2 %v41_v9  ;;  %v293_v23 = vld [vmem:[%s573_s1 + $0x20] sm:$0xff] }
   0x9   :  { %163 = vmatpush.msra.mxu1 %v148_v13  ;;  %314 = vmatpush.msra.mxu3 %v148_v13  ;;  %v146_v24 = vsub.f32 %v423_v21, %v293_v23  ;;  %v23_v25 = vld [vmem:[%s574_s2] sm:$0xff] }
   0xa   :  { %90 = vmatpush.msra.mxu0 %v40_v17  ;;  %311 = vmatpush.msra.mxu2 %v40_v17  ;;  %v27_v27 = vld [vmem:[%s575_s3] sm:$0xff] }
   0xb   :  { %164 = vmatpush.msra.mxu1 %v147_v18  ;;  %315 = vmatpush.msra.mxu3 %v147_v18 }
   0xc   :  { %91 = vmatpush.msra.mxu0 %v39_v22  ;;  %312 = vmatpush.msra.mxu2 %v39_v22 }
   0xd   :  { %165 = vmatpush.msra.mxu1 %v146_v24  ;;  %316 = vmatpush.msra.mxu3 %v146_v24 }
   0xe   :  { %285 = vmatmul.msk.f32.vlgmr.msra.gmra.mxu0 %vm63_vm0, %v23_v25  ;;  %287 = vmatmul.msk.f32.vlgmr.msra.gmra.mxu2 %vm63_vm0, %v25_v26 }
   0xf   :  { %297 = vmatmul.msk.f32.vlgmr.msra.gmra.mxu1 %vm63_vm0, %v23_v25  ;;  %299 = vmatmul.msk.f32.vlgmr.msra.gmra.mxu3 %vm63_vm0, %v25_v26 }
  0x10   :  { %45 = vperm.xlu0 %318, %v27_v27   ;;  %55 = vperm.xlu1 %319, %v29_v28  }
  0x16   :  { %286 = vmatmul.msk.f32.gmra.mxu0 %vm63_vm0, %v24_v29  ;;  %288 = vmatmul.msk.f32.gmra.mxu2 %vm63_vm0, %v26_v30 }
  0x17   :  { %298 = vmatmul.msk.f32.gmra.mxu1 %vm63_vm0, %v24_v29  ;;  %300 = vmatmul.msk.f32.gmra.mxu3 %vm63_vm0, %v26_v30 }
  0x18   :  { %50 = vperm.xlu0 %318, %v28_v31   ;;  %60 = vperm.xlu1 %319, %v30_v32  }
  0x82   :  { %v46_v33 = vpop.permute.xlu0 %45  ;;  %v56_v36 = vpop.permute.xlu1 %55 }
  0x8a   :  { %v51_v41 = vpop.permute.xlu0 %50  ;;  %v61_v63 = vpop.permute.xlu1 %60 }
  0x8b   :  { %v93_v34 = vpop.f32.mrf.mxu0 }
  0x8c   :  { %v167_v35 = vpop.f32.mrf.mxu1  ;;  %v462_v37 = vadd.f32 %v93_v34, %v46_v33 }
  0x8d   :  { %v464_v38 = vadd.f32 %v167_v35, %v46_v33 }
  0x8e   :  { %v119_v44 = vmul.f32 %v462_v37, %v462_v37  ;;  %v106_v50 = vsel %vm105_vm1, %v462_v37, 0.0 }
  0x8f   :  { %v192_v48 = vmul.f32 %v464_v38, %v464_v38  ;;  %v179_v51 = vsel %vm105_vm1, %v464_v38, 0.0 }
  0x90   :  { %v123_v58 = vsel %vm105_vm1, %v119_v44, 0.0 }
  0x91   :  { %v99_v39 = vpop.f32.mrf.mxu2  ;;  %v196_v62 = vsel %vm105_vm1, %v192_v48, 0.0 }
  0x92   :  { %v173_v40 = vpop.f32.mrf.mxu3  ;;  %v466_v42 = vadd.f32 %v99_v39, %v56_v36 }
  0x93   :  { %v96_v43 = vpop.f32.mrf.mxu0  ;;  %v470_v45 = vadd.f32 %v173_v40, %v56_v36 }
  0x94   :  { %v472_v46 = vadd.f32 %v96_v43, %v51_v41  ;;  %v170_v47 = vpop.f32.mrf.mxu1  ;;  %v121_v54 = vmul.f32 %v466_v42, %v466_v42  ;;  %v109_v5 = vsel %vm105_vm1, %v466_v42, 0.0 }
  0x95   :  { %v476_v49 = vadd.f32 %v170_v47, %v51_v41  ;;  %v194_v59 = vmul.f32 %v470_v45, %v470_v45  ;;  %v182_v13 = vsel %vm105_vm1, %v470_v45, 0.0 }
  0x96   :  { %v107_v52 = vsel %vm105_vm1, %v472_v46, 0.0  ;;  %v120_v53 = vmul.f32 %v472_v46, %v472_v46  ;;  %v126_v11 = vsel %vm105_vm1, %v121_v54, 0.0 }
  0x97   :  { %v108_v55 = vadd.f32 %v107_v52, %v106_v50  ;;  %v180_v56 = vsel %vm105_vm1, %v476_v49, 0.0  ;;  %v193_v57 = vmul.f32 %v476_v49, %v476_v49  ;;  %v199_v17 = vsel %vm105_vm1, %v194_v59, 0.0 }
  0x98   :  { %v124_v60 = vsel %vm105_vm1, %v120_v53, 0.0  ;;  %v181_v61 = vadd.f32 %v180_v56, %v179_v51 }
  0x99   :  { %v125_v1 = vadd.f32 %v124_v60, %v123_v58  ;;  %v197_v3 = vsel %vm105_vm1, %v193_v57, 0.0  ;;  %v102_v4 = vpop.f32.mrf.mxu2  ;;  %v110_v14 = vadd.f32 %v109_v5, %v108_v55 }
  0x9a   :  { %v198_v7 = vadd.f32 %v197_v3, %v196_v62  ;;  %v500_v8 = vadd.f32 %v102_v4, %v61_v63  ;;  %v176_v9 = vpop.f32.mrf.mxu3  ;;  %v183_v22 = vadd.f32 %v182_v13, %v181_v61 }
  0x9b   :  { %v505_v16 = vadd.f32 %v176_v9, %v61_v63  ;;  %v127_v24 = vadd.f32 %v126_v11, %v125_v1 }
  0x9c   :  { %v111_v18 = vsel %vm105_vm1, %v500_v8, 0.0  ;;  %v122_v20 = vmul.f32 %v500_v8, %v500_v8  ;;  %v200_v29 = vadd.f32 %v199_v17, %v198_v7 }
  0x9d   :  { %v112_v23 = vadd.f32 %v111_v18, %v110_v14  ;;  %v184_v25 = vsel %vm105_vm1, %v505_v16, 0.0  ;;  %v195_v26 = vmul.f32 %v505_v16, %v505_v16 }
  0x9e   :  { %v128_v27 = vsel %vm105_vm1, %v122_v20, 0.0  ;;  %v185_v28 = vadd.f32 %v184_v25, %v183_v22 }
  0x9f   :  { %v113_v30 = vrot.slane %v112_v23, 4  ;;  %v129_v31 = vadd.f32 %v128_v27, %v127_v24  ;;  %v201_v32 = vsel %vm105_vm1, %v195_v26, 0.0  ;;  %v229_v26 = vld [vmem:[%s577_s5] sm:$0x1] }
  0xa0   :  { %v186_v33 = vrot.slane %v185_v28, 4  ;;  %v202_v34 = vadd.f32 %v201_v32, %v200_v29 }
  0xa1   :  { %v114_v35 = vadd.f32 %v113_v30, %v112_v23  ;;  %v130_v36 = vrot.slane %v129_v31, 4  ;;  %v227_v23 = vld [vmem:[%s576_s4] sm:$0x1] }
  0xa2   :  { %v187_v39 = vadd.f32 %v186_v33, %v185_v28  ;;  %v203_v40 = vrot.slane %v202_v34, 4 }
  0xa3   :  { %v115_v41 = vrot.slane %v114_v35, 2  ;;  %v131_v43 = vadd.f32 %v130_v36, %v129_v31 }
  0xa4   :  { %v188_v44 = vrot.slane %v187_v39, 2  ;;  %v204_v47 = vadd.f32 %v203_v40, %v202_v34 }
  0xa5   :  { %v116_v48 = vadd.f32 %v115_v41, %v114_v35  ;;  %v132_v50 = vrot.slane %v131_v43, 2 }
  0xa6   :  { %v189_v51 = vadd.f32 %v188_v44, %v187_v39  ;;  %v205_v52 = vrot.slane %v204_v47, 2 }
  0xa7   :  { %v117_v53 = vrot.slane %v116_v48, 1  ;;  %v133_v54 = vadd.f32 %v132_v50, %v131_v43 }
  0xa8   :  { %v190_v55 = vrot.slane %v189_v51, 1  ;;  %v206_v56 = vadd.f32 %v205_v52, %v204_v47 }
  0xa9   :  { %v118_v57 = vadd.f32 %v117_v53, %v116_v48  ;;  %v134_v58 = vrot.slane %v133_v54, 1 }
  0xaa   :  { %v191_v59 = vadd.f32 %v190_v55, %v189_v51  ;;  %v207_v60 = vrot.slane %v206_v56, 1 }
  0xab   :  { %v135_v61 = vadd.f32 %v134_v58, %v133_v54 }
  0xac   :  { %v208_v62 = vadd.f32 %v207_v60, %v206_v56  ;;  %v209_v63 = vadd.f32 %v191_v59, %v118_v57 }
  0xae   :  { %v210_v1 = vadd.f32 %v208_v62, %v135_v61  ;;  %v211_v3 = vmul.f32 0.015625, %v209_v63 }
  0xb0   :  { %v212_v4 = vmul.f32 0.015625, %v210_v1  ;;  %v213_v5 = vmul.f32 %v211_v3, %v211_v3 }
  0xb2   :  { %v214_v7 = vsub.f32 %v212_v4, %v213_v5 }
  0xb4   :  { %v215_v9 = vmax.f32 %v214_v7, 0.0 }
  0xb6   :  { %v216_v11 = vadd.f32 1e-05, %v215_v9 }
  0xb8   :  { %320 = vrsqrt.f32 %v216_v11  ;;  %vm223_vm3 = vweird.f32 %v216_v11 }
  0xbe   :  { %v321_v13 = vpop.eup %320 }
  0xbf   :  { %v218_v14 = vmul.f32 %v321_v13, %v216_v11  ;;  %vm224_vm2 = vweird.f32 %v321_v13 }
  0xc0   :  { %vm225_vm4 = vmor %vm223_vm3, %vm224_vm2 }
  0xc1   :  { %v219_v17 = vmul.f32 %v321_v13, %v218_v14 }
  0xc3   :  { %v220_v18 = vmul.f32 0.5, %v219_v17 }
  0xc5   :  { %v221_v20 = vsub.f32 1.5, %v220_v18 }
  0xc7   :  { %v222_v22 = vmul.f32 %v321_v13, %v221_v20 }
  0xc9   :  { %v226_v24 = vsel %vm225_vm4, %v321_v13, %v222_v22 }
  0xca   :  { %v228_v25 = vmul.f32 %v227_v23, %v226_v24 }
  0xcc   :  { %v230_v27 = vmul.f32 %v228_v25, %v211_v3  ;;  %v232_v28 = vperm.slane %v228_v25, 0 }
  0xce   :  { %v231_v29 = vsub.f32 %v229_v26, %v230_v27  ;;  %v233_v30 = vmul.f32 %v232_v28, %v462_v37  ;;  %v234_v31 = vmul.f32 %v232_v28, %v472_v46  ;;  %v235_v32 = vmul.f32 %v232_v28, %v466_v42 }
  0xcf   :  { %v236_v33 = vmul.f32 %v232_v28, %v500_v8  ;;  %v256_v35 = vmul.f32 %v232_v28, %v464_v38  ;;  %v257_v36 = vmul.f32 %v232_v28, %v476_v49  ;;  %v258_v39 = vmul.f32 %v232_v28, %v470_v45 }
  0xd0   :  { %v238_v34 = vperm.slane %v231_v29, 0  ;;  %v259_v40 = vmul.f32 %v232_v28, %v505_v16 }
  0xd2   :  { %v240_v41 = vadd.f32 %v238_v34, %v233_v30  ;;  %v241_v43 = vadd.f32 %v238_v34, %v234_v31  ;;  %v242_v44 = vadd.f32 %v238_v34, %v235_v32  ;;  %v243_v47 = vadd.f32 %v238_v34, %v236_v33 }
  0xd3   :  { %v260_v37 = vadd.f32 %v256_v35, %v238_v34  ;;  %v261_v48 = vadd.f32 %v257_v36, %v238_v34  ;;  %v262_v46 = vadd.f32 %v258_v39, %v238_v34  ;;  %v263_v50 = vadd.f32 %v259_v40, %v238_v34 }
  0xd4   :  { %v244_v42 = vmax.f32 %v240_v41, 0.0  ;;  %v245_v51 = vmax.f32 %v241_v43, 0.0  ;;  %v246_v8 = vmax.f32 %v242_v44, 0.0  ;;  %v247_v52 = vmax.f32 %v243_v47, 0.0 }
  0xd5   :  { %v268_v53 = vmax.f32 %v260_v37, 0.0  ;;  %v269_v38 = vmax.f32 %v261_v48, 0.0  ;;  %v270_v54 = vmax.f32 %v262_v46, 0.0  ;;  %v271_v56 = vmax.f32 %v263_v50, 0.0 }
  0xd6   :  { %v248_v49 = vadd.f32 %v244_v42, %v415_v19  ;;  %v249_v45 = vadd.f32 %v245_v51, %v396_v12  ;;  %v250_v16 = vadd.f32 %v246_v8, %v378_v6  ;;  %v251_v55 = vadd.f32 %v247_v52, %v361_v0 }
  0xd7   :  { %v272_v57 = vadd.f32 %v423_v21, %v268_v53  ;;  %v273_v12 = vadd.f32 %v405_v15, %v269_v38  ;;  %v274_v0 = vadd.f32 %v388_v10, %v270_v54  ;;  %v275_v6 = vadd.f32 %v369_v2, %v271_v56 }
  0xd8   :  { %252 = vst.msk [vmem:[%s578_s6] sm:$0xff] %vm105_vm1, %v248_v49 }
  0xd9   :  { %253 = vst.msk [vmem:[%s578_s6 + $0x8] sm:$0xff] %vm105_vm1, %v249_v45 }
  0xda   :  { %254 = vst.msk [vmem:[%s578_s6 + $0x10] sm:$0xff] %vm105_vm1, %v250_v16 }
  0xdb   :  { %255 = vst.msk [vmem:[%s578_s6 + $0x18] sm:$0xff] %vm105_vm1, %v251_v55 }
  0xdc   :  { %305 = vst.msk [vmem:[%s578_s6 + $0x20] sm:$0xff] %vm105_vm1, %v272_v57 }
  0xdd   :  { %306 = vst.msk [vmem:[%s578_s6 + $0x28] sm:$0xff] %vm105_vm1, %v273_v12 }
  0xde   :  { %307 = vst.msk [vmem:[%s578_s6 + $0x30] sm:$0xff] %vm105_vm1, %v274_v0 }
  0xdf   :  { %308 = vst.msk [vmem:[%s578_s6 + $0x38] sm:$0xff] %vm105_vm1, %v275_v6 }

</bundles_post_ra>
